<compile_context>
chip_gen: v5e
topology: v5e:2x2
jax: 0.10.0
libtpu: 0.0.40
codegen_flags: <defaults>
</compile_context>

<pallas_src>
import jax
import jax.numpy as jnp
from jax.experimental import pallas as pl
from jax.experimental.pallas import tpu as pltpu

LANE = 128


# ----------------------------- Pallas kernel --------------------------------
def _gcn_kernel(a_ref, x_ref, w1_ref, b1_ref, w2_ref, b2_ref, o_ref):
    # Per-step refs (grid dim squeezed by BlockSpec):
    #   a [M,M] block-diagonal, x [M,Fin], w1 [Fin,H], b1 [1,H],
    #   w2 [H,Cpad], b2 [1,Cpad] (padded lanes carry -1e30), o [M,Cpad].
    a = a_ref[...]

    # ---- GCNConv 1: A @ (X @ W1) + b1  (flat weight matmul first: full-M rows) ----
    xw1 = jnp.dot(x_ref[...], w1_ref[...], preferred_element_type=jnp.float32)   # [M, H]
    h = jnp.dot(a, xw1, preferred_element_type=jnp.float32) + b1_ref[...]        # [M, H]

    # ---- ReLU ----
    h = jnp.maximum(h, 0.0)

    # ---- Dropout(p=0.3): eval-mode -> identity ----
    # TODO(synk): training-mode stochastic dropout via pltpu.prng_seed/prng_random_bits.

    # ---- GCNConv 2: (A @ H) @ W2 + b2  (narrow contraction against A) ----
    ah = jnp.dot(a, h, preferred_element_type=jnp.float32)                        # [M, H]
    z = jnp.dot(ah, w2_ref[...], preferred_element_type=jnp.float32) + b2_ref[...]  # [M, Cpad]

    # ---- log_softmax over lanes; padded lanes already sit at ~-1e30 via the bias ----
    m = jnp.max(z, axis=1, keepdims=True)
    zs = z - m
    lse = jnp.log(jnp.sum(jnp.exp(zs), axis=1, keepdims=True))
    o_ref[...] = zs - lse  # full lane-dense (M, 128) store; padded lanes sliced off outside


# ------------------------------ wrapper --------------------------------------
def _block_diag(mats):
    """(G, N, N) -> (G*N, G*N) block-diagonal matrix."""
    G, N, _ = mats.shape
    eye = jnp.eye(G, dtype=mats.dtype)
    return (eye[:, None, :, None] * mats[:, :, None, :]).reshape(G * N, G * N)


def gcn_classifier_forward(a_hat, x, w1, b1, w2, b2, *, training=False):
    """Batched forward. a_hat: [B,N,N], x: [B,N,Fin]; weights shared across graphs."""
    assert not training, "Kernel implements eval-mode forward (dropout = identity)."
    B, N, _ = a_hat.shape
    Fin = x.shape[-1]
    H = w1.shape[1]
    C = w2.shape[1]
    c_pad = max(LANE, ((C + LANE - 1) // LANE) * LANE)

    # At most 2 grid steps: 1 (v5e/v6e optimal) or 2 (lets v7x shard across its 2 TCs).
    NB = 2 if (B % 2 == 0 and B >= 2) else 1
    Bh = B // NB
    M = Bh * N

    # Block-diagonal adjacency and flat features per grid step.
    a_bd = jax.vmap(_block_diag)(a_hat.reshape(NB, Bh, N, N)).astype(jnp.float32)  # (NB, M, M)
    xf = x.reshape(NB, M, Fin).astype(jnp.float32)                                 # (NB, M, Fin)

    # One-time weight prep (hoist out of the call if invoked repeatedly).
    w1f = w1.astype(jnp.float32)
    b1r = b1.reshape(1, H).astype(jnp.float32)
    w2p = jnp.zeros((H, c_pad), jnp.float32).at[:, :C].set(w2.astype(jnp.float32))
    # Bake the class-padding mask into the bias: padded logits emerge at -1e30.
    b2p = jnp.full((1, c_pad), -1e30, jnp.float32).at[0, :C].set(b2.astype(jnp.float32))

    out = pl.pallas_call(
        _gcn_kernel,
        out_shape=jax.ShapeDtypeStruct((NB, M, c_pad), jnp.float32),
        grid=(NB,),
        in_specs=[
            pl.BlockSpec((None, M, M), lambda b: (b, 0, 0)),      # A_bd per step
            pl.BlockSpec((None, M, Fin), lambda b: (b, 0, 0)),    # X per step
            pl.BlockSpec((Fin, H), lambda b: (0, 0)),             # W1 (shared, resident)
            pl.BlockSpec((1, H), lambda b: (0, 0)),               # b1
            pl.BlockSpec((H, c_pad), lambda b: (0, 0)),           # W2 (padded)
            pl.BlockSpec((1, c_pad), lambda b: (0, 0)),           # b2 (padded, mask baked in)
        ],
        out_specs=pl.BlockSpec((None, M, c_pad), lambda b: (b, 0, 0)),
        compiler_params=pltpu.CompilerParams(
            dimension_semantics=("parallel",),   # shard the <=2 steps across TCs on v7x
        ),
    )(a_bd, xf, w1f, b1r, w2p, b2p)

    return out.reshape(B, N, c_pad)[:, :, :C]


# ------------------------------ JAX glue -------------------------------------
def build_normalized_adjacency(edge_index, num_nodes):
    """Dense A_hat = D^-1/2 (A + I) D^-1/2 matching PyG GCNConv/gcn_norm with unit
    edge weights: duplicate (non-loop) edges accumulate, and every node ends up with
    exactly one unit self-loop (add_remaining_self_loops with fill_value=1 and
    edge_weight=None).  row = dst, col = src (source_to_target flow)."""
    src, dst = edge_index[0], edge_index[1]
    non_loop = (src != dst).astype(jnp.float32)
    adj = jnp.zeros((num_nodes, num_nodes), dtype=jnp.float32)
    adj = adj.at[dst, src].add(non_loop)                       # duplicates sum; self-loops excluded
    adj = adj + jnp.eye(num_nodes, dtype=jnp.float32)          # exactly one unit self-loop per node
    deg = jnp.sum(adj, axis=1)                                 # in-degree incl. self-loop
    dinv = jax.lax.rsqrt(jnp.maximum(deg, 1e-12))
    return dinv[:, None] * adj * dinv[None, :]


def glorot(key, fan_in, fan_out):
    limit = jnp.sqrt(6.0 / (fan_in + fan_out))
    return jax.random.uniform(key, (fan_in, fan_out), jnp.float32, -limit, limit)


# ------------------------------- main ----------------------------------------
if __name__ == "__main__":
    key = jax.random.PRNGKey(0)
    k_x, k_e, k_w1, k_w2 = jax.random.split(key, 4)

    # Batch of small graphs: 8 graphs, 16 nodes, 16 input feats, 32 hidden, 8 classes.
    batch, num_nodes, input_dim, hidden_dim, output_dim = 8, 16, 16, 32, 8
    num_edges = 40

    x = jax.random.normal(k_x, (batch, num_nodes, input_dim), jnp.float32)
    edge_index = jax.random.randint(k_e, (batch, 2, num_edges), 0, num_nodes, jnp.int32)

    # Deterministic parameter init (Glorot weights, zero biases) — shapes from __init__.
    w1 = glorot(k_w1, input_dim, hidden_dim)
    b1 = jnp.zeros((hidden_dim,), jnp.float32)
    w2 = glorot(k_w2, hidden_dim, output_dim)
    b2 = jnp.zeros((output_dim,), jnp.float32)

    a_hat = jax.vmap(build_normalized_adjacency, in_axes=(0, None))(edge_index, num_nodes)

    out = gcn_classifier_forward(a_hat, x, w1, b1, w2, b2)
    out = jax.block_until_ready(out)

    # Sanity: shape and log_softmax rows must sum to ~1 in prob space.
    assert out.shape == (batch, num_nodes, output_dim)
    row_sums = jnp.sum(jnp.exp(out), axis=-1)
    assert bool(jnp.all(jnp.abs(row_sums - 1.0) < 1e-4))

    # Cross-check against a pure-JAX reference of the same forward pass.
    def ref_forward(a, xf):
        h = jnp.maximum(a @ xf @ w1 + b1, 0.0)
        z = a @ h @ w2 + b2
        return jax.nn.log_softmax(z, axis=-1)

    ref = jax.vmap(ref_forward)(a_hat, x)
    assert bool(jnp.all(jnp.abs(out - ref) < 1e-4))

    print("KERNEL_OK")
</pallas_src>

<mosaic_0001>
module attributes {stable_mosaic.version = 11 : i64} {
  func.func @_gcn_kernel(%arg0: i32, %arg1: memref<1x64x64xf32, #tpu.memory_space<vmem>>, %arg2: memref<1x64x16xf32, #tpu.memory_space<vmem>>, %arg3: memref<16x32xf32, #tpu.memory_space<vmem>>, %arg4: memref<1x32xf32, #tpu.memory_space<vmem>>, %arg5: memref<32x128xf32, #tpu.memory_space<vmem>>, %arg6: memref<1x128xf32, #tpu.memory_space<vmem>>, %arg7: memref<1x64x128xf32, #tpu.memory_space<vmem>>) attributes {dimension_semantics = [#tpu.dimension_semantics<parallel>], iteration_bounds = array<i64: 2>, scalar_prefetch = 0 : i64, scratch_operands = 0 : i64, tpu.core_type = #tpu.core_type<tc>, window_params = [{transform_indices = @transform_0, window_bounds = array<i64: 1, 64, 64>}, {transform_indices = @transform_1, window_bounds = array<i64: 1, 64, 16>}, {pipeline_mode = #tpu.pipeline_mode<synchronous>, transform_indices = @transform_2, window_bounds = array<i64: 16, 32>}, {pipeline_mode = #tpu.pipeline_mode<synchronous>, transform_indices = @transform_3, window_bounds = array<i64: 1, 32>}, {pipeline_mode = #tpu.pipeline_mode<synchronous>, transform_indices = @transform_4, window_bounds = array<i64: 32, 128>}, {pipeline_mode = #tpu.pipeline_mode<synchronous>, transform_indices = @transform_5, window_bounds = array<i64: 1, 128>}, {transform_indices = @transform_6, window_bounds = array<i64: 1, 64, 128>}]} {
    %c0 = arith.constant 0 : index
    %c0_0 = arith.constant 0 : index
    %c0_1 = arith.constant 0 : index
    %0 = vector.load %arg1[%c0, %c0_0, %c0_1] : memref<1x64x64xf32, #tpu.memory_space<vmem>>, vector<1x64x64xf32>
    %1 = vector.shape_cast %0 : vector<1x64x64xf32> to vector<64x64xf32>
    %c0_2 = arith.constant 0 : index
    %c0_3 = arith.constant 0 : index
    %c0_4 = arith.constant 0 : index
    %2 = vector.load %arg2[%c0_2, %c0_3, %c0_4] : memref<1x64x16xf32, #tpu.memory_space<vmem>>, vector<1x64x16xf32>
    %3 = vector.shape_cast %2 : vector<1x64x16xf32> to vector<64x16xf32>
    %c0_5 = arith.constant 0 : index
    %c0_6 = arith.constant 0 : index
    %4 = vector.load %arg3[%c0_5, %c0_6] : memref<16x32xf32, #tpu.memory_space<vmem>>, vector<16x32xf32>
    %cst = arith.constant dense<0.000000e+00> : vector<64x32xf32>
    %5 = tpu.matmul %3, %4, %cst {dimension_numbers = #tpu.dot_dimension_numbers<[1], [0], [0], [1], [0, 0, 1, 1], [], []>} : vector<64x16xf32>, vector<16x32xf32>, vector<64x32xf32> -> vector<64x32xf32>
    %cst_7 = arith.constant dense<0.000000e+00> : vector<64x32xf32>
    %6 = tpu.matmul %1, %5, %cst_7 {dimension_numbers = #tpu.dot_dimension_numbers<[1], [0], [0], [1], [0, 0, 1, 1], [], []>} : vector<64x64xf32>, vector<64x32xf32>, vector<64x32xf32> -> vector<64x32xf32>
    %c0_8 = arith.constant 0 : index
    %c0_9 = arith.constant 0 : index
    %7 = vector.load %arg4[%c0_8, %c0_9] : memref<1x32xf32, #tpu.memory_space<vmem>>, vector<1x32xf32>
    %8 = vector.broadcast %7 : vector<1x32xf32> to vector<64x32xf32>
    %9 = arith.addf %6, %8 : vector<64x32xf32>
    %cst_10 = arith.constant 0.000000e+00 : f32
    %10 = vector.broadcast %cst_10 : f32 to vector<64x32xf32>
    %11 = arith.maximumf %9, %10 : vector<64x32xf32>
    %cst_11 = arith.constant dense<0.000000e+00> : vector<64x32xf32>
    %12 = tpu.matmul %1, %11, %cst_11 {dimension_numbers = #tpu.dot_dimension_numbers<[1], [0], [0], [1], [0, 0, 1, 1], [], []>} : vector<64x64xf32>, vector<64x32xf32>, vector<64x32xf32> -> vector<64x32xf32>
    %c0_12 = arith.constant 0 : index
    %c0_13 = arith.constant 0 : index
    %13 = vector.load %arg5[%c0_12, %c0_13] : memref<32x128xf32, #tpu.memory_space<vmem>>, vector<32x128xf32>
    %cst_14 = arith.constant dense<0.000000e+00> : vector<64x128xf32>
    %14 = tpu.matmul %12, %13, %cst_14 {dimension_numbers = #tpu.dot_dimension_numbers<[1], [0], [0], [1], [0, 0, 1, 1], [], []>} : vector<64x32xf32>, vector<32x128xf32>, vector<64x128xf32> -> vector<64x128xf32>
    %c0_15 = arith.constant 0 : index
    %c0_16 = arith.constant 0 : index
    %15 = vector.load %arg6[%c0_15, %c0_16] : memref<1x128xf32, #tpu.memory_space<vmem>>, vector<1x128xf32>
    %16 = vector.broadcast %15 : vector<1x128xf32> to vector<64x128xf32>
    %17 = arith.addf %14, %16 : vector<64x128xf32>
    %cst_17 = arith.constant dense<0xFF800000> : vector<64xf32>
    %18 = vector.multi_reduction <maximumf>, %17, %cst_17 [1] : vector<64x128xf32> to vector<64xf32>
    %19 = vector.shape_cast %18 : vector<64xf32> to vector<64x1xf32>
    %20 = vector.broadcast %19 : vector<64x1xf32> to vector<64x128xf32>
    %21 = arith.subf %17, %20 : vector<64x128xf32>
    %22 = math.exp %21 : vector<64x128xf32>
    %cst_18 = arith.constant dense<0.000000e+00> : vector<64xf32>
    %23 = vector.multi_reduction <add>, %22, %cst_18 [1] : vector<64x128xf32> to vector<64xf32>
    %24 = vector.shape_cast %23 : vector<64xf32> to vector<64x1xf32>
    %25 = math.log %24 : vector<64x1xf32>
    %26 = vector.broadcast %25 : vector<64x1xf32> to vector<64x128xf32>
    %27 = arith.subf %21, %26 : vector<64x128xf32>
    %c0_19 = arith.constant 0 : index
    %c0_20 = arith.constant 0 : index
    %c0_21 = arith.constant 0 : index
    %28 = vector.load %arg7[%c0_19, %c0_20, %c0_21] : memref<1x64x128xf32, #tpu.memory_space<vmem>>, vector<1x64x128xf32>
    %29 = vector.shape_cast %28 : vector<1x64x128xf32> to vector<64x128xf32>
    %30 = vector.shape_cast %27 : vector<64x128xf32> to vector<1x64x128xf32>
    tpu.vector_store %arg7[%c0_19, %c0_20, %c0_21], %30 {strides = array<i32>} : memref<1x64x128xf32, #tpu.memory_space<vmem>>, vector<1x64x128xf32>,
    return
  }
  func.func @transform_0(%arg0: i32) -> (i32, i32, i32) {
    %c0_i32 = arith.constant 0 : i32
    %c0_i32_0 = arith.constant 0 : i32
    %c0_i32_1 = arith.constant 0 : i32
    return %arg0, %c0_i32, %c0_i32_0 : i32, i32, i32
  }
  func.func @transform_1(%arg0: i32) -> (i32, i32, i32) {
    %c0_i32 = arith.constant 0 : i32
    %c0_i32_0 = arith.constant 0 : i32
    %c0_i32_1 = arith.constant 0 : i32
    return %arg0, %c0_i32, %c0_i32_0 : i32, i32, i32
  }
  func.func @transform_2(%arg0: i32) -> (i32, i32) {
    %c0_i32 = arith.constant 0 : i32
    %c0_i32_0 = arith.constant 0 : i32
    %c0_i32_1 = arith.constant 0 : i32
    return %c0_i32, %c0_i32_0 : i32, i32
  }
  func.func @transform_3(%arg0: i32) -> (i32, i32) {
    %c0_i32 = arith.constant 0 : i32
    %c0_i32_0 = arith.constant 0 : i32
    %c0_i32_1 = arith.constant 0 : i32
    return %c0_i32, %c0_i32_0 : i32, i32
  }
  func.func @transform_4(%arg0: i32) -> (i32, i32) {
    %c0_i32 = arith.constant 0 : i32
    %c0_i32_0 = arith.constant 0 : i32
    %c0_i32_1 = arith.constant 0 : i32
    return %c0_i32, %c0_i32_0 : i32, i32
  }
  func.func @transform_5(%arg0: i32) -> (i32, i32) {
    %c0_i32 = arith.constant 0 : i32
    %c0_i32_0 = arith.constant 0 : i32
    %c0_i32_1 = arith.constant 0 : i32
    return %c0_i32, %c0_i32_0 : i32, i32
  }
  func.func @transform_6(%arg0: i32) -> (i32, i32, i32) {
    %c0_i32 = arith.constant 0 : i32
    %c0_i32_0 = arith.constant 0 : i32
    %c0_i32_1 = arith.constant 0 : i32
    return %arg0, %c0_i32, %c0_i32_0 : i32, i32, i32
  }
}

</mosaic_0001>

<bundles_post_ra>
// kernel: tpu_custom_call.1
= control target key start
LH: loop header
LB: loop body
LE: loop exit
PB: predicated region body
PF: predicated region fallthrough
CT: control target
= control target key end

     0   :  { %11 = vsyncpa [#allocation3], 0  ;;  %s1205_s0 = inlined_call_operand.vmem [shape: f32[2,64,64], index: 0, kind: input, shape index: {}]   ;;  %s1206_s1 = inlined_call_operand.vmem [shape: f32[2,64,16], index: 1, kind: input, shape index: {}]   ;;  %s1207_s2 = inlined_call_operand.hbm [shape: f32[16,32], index: 2, kind: input, shape index: {}]   ;;  %s1208_s3 = inlined_call_operand.vmem [shape: f32[1,32], index: 3, kind: input, shape index: {}]   ;;  %s1209_s4 = inlined_call_operand.vmem [shape: f32[32,128], index: 4, kind: input, shape index: {}]   ;;  %s1210_s5 = inlined_call_operand.vmem [shape: f32[1,128], index: 5, kind: input, shape index: {}]   ;;  %s1211_s6 = inlined_call_operand.hbm [shape: f32[2,64,128], index: 6, kind: output, shape index: {}]  }
   0x1   :  { %12 = vsyncpa [#allocation4], 0 }
   0x2   :  { %14 = vsyncpa [#allocation4 + $0x1], 0  ;;  %s1031_s21 = smov 0   ;;  %s1033_s22 = smov 0  }
   0x3   :  { %s1035_s23 = smov 0   ;;  %s1037_s24 = smov 0  }
   0x4 LB: > { %s1052_s25 = sadd.s32 4294967295, %s989_s24   ;;  %s754_s26 = sadd.s32 4294967294, %s989_s24   ;;  %s989_s24 = sphi %s1037_s24, %s1217_s24   ;;  %s985_s23 = sphi %s1035_s23, %s1216_s23   ;;  %s981_s22 = sphi %s1033_s22, %s1215_s22   ;;  %s977_s21 = sphi %s1031_s21, %s1214_s21  }
   0x5   : > { %s1056_s27 = sadd.s32 1, %s989_s24   ;;  %s163_s28 = sadd.s32 1, %s985_s23 }
   0x6   : > { %s160_s29 = ssub.s32 %s989_s24, %s1056_s27  ;;  %p173_p0 = scmp.ne.s32.totalorder %s985_s23, %s981_s22 }
   0x7   : > { %p161_p1 = scmp.eq.s32.totalorder %s160_s29, 0  ;;  %p174_p2 = scmp.eq.s32.totalorder %s1052_s25, 1 }
   0x8   : > { %p179_p3 = scmp.ne.s32.totalorder %s981_s22, %s977_s21  ;;  %p180_p4 = scmp.eq.s32.totalorder %s754_s26, 1 }
   0x9   : > { %s1067_s30 = scalar_select %p161_p1, %s985_s23, %s163_s28  }
   0xa   : > { %p1069_p5 = por %p174_p2, %p173_p0  ;;  %p1073_p6 = por %p180_p4, %p179_p3 }
   0xb   : > { %p755_p7 = scmp.ge.s32.totalorder %s989_s24, 1  ;;  %p187_p8 = scmp.lt.s32.totalorder %s989_s24, 3 }
   0xc   : > { %p819_p9 = scmp.eq.s32.totalorder %s1052_s25, 0  ;;  %s198_s11 = sshll.u32 %s1207_s2, 4  ;;  %s199_s11 = int_to_ptr.hbm [resolvable:$true] %s198_s11 }
   0xd   : > { %p188_p10 = pnand %p755_p7, %p187_p8  ;;  %s991_s12 = smov [#allocation2]  }
   0xe   : > { %s200_s13 = sshll.u32 %s991_s12, 4  ;;  %s992_s14 = smov 128   ;;  %s201_s13 = int_to_ptr.vmem [resolvable:$true] %s200_s13 }
   0xf   : > { %p811_p11 = pneg %p188_p10  ;;  %s993_s15 = smov 8  }
  0x10   : > { %241 = sbr.rel (%p188_p10) target bundleno = 1007 (0x3ef), region = 44 }
  0x11   : > { %p812_p12 = pnand %p819_p9, %p811_p11 }
  0x13   : > { %814 = dma.hbm_to_vmem [thread:$0]  (!%p812_p12), %s199_s11, 256, %s201_s13, [#allocation3], %s992_s14, %s992_s14, %s993_s15  }
  0x15   : > { %968 = dma.done.wait (%p819_p9), [#allocation3], 256  }
  0x16   : > { %970 = vsyncadd (%p819_p9), [#allocation3], 4294967040  ;;  %p277_p13 = scmp.lt.s32.totalorder %s1052_s25, 1  ;;  %v304_v0 = vld [vmem:[#allocation2 + $0x8] sm:$0xff]  ;;  %v303_v1 = vld [vmem:[#allocation2] sm:$0xff]  ;;  %vm305_vm0 = vcmask 130048  }
  0x17   : > { %344 = vmatpush.msra.mxu0 %v304_v0  ;;  %vm375_vm1 = vcmask 523264   ;;  %v859_v33 = vld [vmem:[%s1208_s3] ss:$0 sm:$0xff]  ;;  %v493_v51 = vld [vmem:[%s1209_s4 + $0x18] sm:$0xff]  ;;  %v492_v52 = vld [vmem:[%s1209_s4 + $0x10] sm:$0xff]  ;;  %vm498_vm2 = vcmask 261120  }
  0x18   : > { %s1091_s16 = scalar_select %p277_p13, %s1052_s25, 1  ;;  %535 = vmatpush.msra.mxu3 %v493_v51  ;;  %v491_v53 = vld [vmem:[%s1209_s4 + $0x8] sm:$0xff]  ;;  %v490_v54 = vld [vmem:[%s1209_s4] sm:$0xff] }
  0x19   : > { %345 = vmatpush.msra.mxu0 %v303_v1  ;;  %v860_v63 = vld [vmem:[%s1210_s5] ss:$0 sm:$0xff]  ;;  %s274_s26 = sand.u32 1, %s981_s22   ;;  %s804_s9 = sshll.u32 %s1052_s25, 6 }
  0x1a   : > { %s802_s17 = sshll.u32 %s1091_s16, 6  ;;  %536 = vmatpush.msra.mxu3 %v492_v52  ;;  %s760_s28 = sshll.u32 %s274_s26, 6 }
  0x1b   : > { %s286_s20 = scalar_lea.vmem %s1206_s1, %s802_s17  ;;  %s281_s29 = scalar_lea.vmem %s1205_s0, %s802_s17 }
  0x1c   : > { %v295_v2 = vld [vmem:[%s286_s20] sm:$0xff]  ;;  %v296_v3 = vld [vmem:[%s286_s20 + $0x8] sm:$0xff]  ;;  %v297_v4 = vld [vmem:[%s286_s20 + $0x10] sm:$0xff]  ;;  %537 = vmatpush.msra.mxu3 %v491_v53  ;;  %s664_s12 = scalar_lea.hbm %s1211_s6, %s804_s9  ;;  %s653_s15 = scalar_lea.sflag [#allocation4], %s274_s26 }
  0x1d   : > { %765 = vmatmul.msk.f32.vlgmr.msra.gmra.mxu0 %vm305_vm0, %v295_v2  ;;  %v298_v5 = vld [vmem:[%s286_s20 + $0x18] sm:$0xff]  ;;  %v299_v6 = vld [vmem:[%s286_s20 + $0x20] sm:$0xff]  ;;  %v300_v7 = vld [vmem:[%s286_s20 + $0x28] sm:$0xff]  ;;  %s667_s14 = sshll.u32 %s664_s12, 4  ;;  %s943_s19 = scalar_lea.hbm %s1211_s6, 128  ;;  %s668_s14 = int_to_ptr.hbm [resolvable:$true] %s667_s14 }
  0x1e   : > { %v301_v8 = vld [vmem:[%s286_s20 + $0x30] sm:$0xff]  ;;  %v302_v9 = vld [vmem:[%s286_s20 + $0x38] sm:$0xff]  ;;  %v287_v18 = vld [vmem:[%s281_s29] sm:$0xff]  ;;  %538 = vmatpush.msra.mxu3 %v490_v54  ;;  %s937_s25 = sshra.s32 %s668_s14, 4  ;;  %s938_s25 = int_to_ptr.hbm [resolvable:$true] %s937_s25 }
  0x1f   : > { %v288_v19 = vld [vmem:[%s281_s29 + $0x8] sm:$0xff]  ;;  %v289_v20 = vld [vmem:[%s281_s29 + $0x10] sm:$0xff]  ;;  %v290_v21 = vld [vmem:[%s281_s29 + $0x18] sm:$0xff]  ;;  %s939_s16 = scalar_lea.hbm %s938_s25, 64  ;;  %p944_p3 = scmp.lt.s32.totalorder %s938_s25, %s1211_s6 }
  0x20   : > { %v291_v22 = vld [vmem:[%s281_s29 + $0x20] sm:$0xff]  ;;  %v292_v23 = vld [vmem:[%s281_s29 + $0x28] sm:$0xff]  ;;  %v293_v24 = vld [vmem:[%s281_s29 + $0x30] sm:$0xff]  ;;  %p940_p0 = scmp.ne.s32.totalorder %s938_s25, %s939_s16  ;;  %p945_p4 = scmp.lt.s32.totalorder %s943_s19, %s939_s16 }
  0x21   : > { %v294_v25 = vld [vmem:[%s281_s29 + $0x38] sm:$0xff]  ;;  %s1160_s29 = scalar_lea.vmem [#allocation5], %s760_s28 }
  0x22   : > { %s665_s13 = sshll.u32 %s1160_s29, 4  ;;  %p941_p1 = pnand %p940_p0, %p1069_p5  ;;  %s666_s13 = int_to_ptr.vmem [resolvable:$true] %s665_s13 }
  0x23   : > { %p946_p7 = por %p945_p4, %p944_p3 }
  0x24   : > { %p942_p2 = pneg %p941_p1 }
  0x25   : > { %766 = vmatmul.msk.f32.gmra.mxu0 %vm305_vm0, %v296_v3 }
  0x26   : > { %p947_p8 = pnand %p946_p7, %p942_p2 }
  0x2d   : > { %767 = vmatmul.msk.f32.gmra.mxu0 %vm305_vm0, %v297_v4 }
  0x35   : > { %768 = vmatmul.msk.f32.gmra.mxu0 %vm305_vm0, %v298_v5 }
  0x3d   : > { %769 = vmatmul.msk.f32.gmra.mxu0 %vm305_vm0, %v299_v6 }
  0x45   : > { %770 = vmatmul.msk.f32.gmra.mxu0 %vm305_vm0, %v300_v7 }
  0x4d   : > { %771 = vmatmul.msk.f32.gmra.mxu0 %vm305_vm0, %v301_v8 }
  0x55   : > { %772 = vmatmul.msk.f32.gmra.mxu0 %vm305_vm0, %v302_v9 }
  0x9a   : > { %v347_v10 = vpop.f32.mrf.mxu0 }
  0xa2   : > { %v350_v11 = vpop.f32.mrf.mxu0 }
  0xaa   : > { %v353_v12 = vpop.f32.mrf.mxu0 }
  0xb2   : > { %v356_v13 = vpop.f32.mrf.mxu0 }
  0xba   : > { %v359_v14 = vpop.f32.mrf.mxu0 }
  0xc2   : > { %v362_v15 = vpop.f32.mrf.mxu0 }
  0xca   : > { %v365_v16 = vpop.f32.mrf.mxu0 }
  0xd2   : > { %v368_v17 = vpop.f32.mrf.mxu0 }
  0xd3   : > { %408 = vmatpush.msra.mxu1 %v368_v17 }
  0xd5   : > { %409 = vmatpush.msra.mxu1 %v365_v16 }
  0xd7   : > { %410 = vmatpush.msra.mxu1 %v362_v15 }
  0xd9   : > { %411 = vmatpush.msra.mxu1 %v359_v14 }
  0xdb   : > { %412 = vmatpush.msra.mxu1 %v356_v13 }
  0xdd   : > { %413 = vmatpush.msra.mxu1 %v353_v12 }
  0xdf   : > { %414 = vmatpush.msra.mxu1 %v350_v11 }
  0xe1   : > { %415 = vmatpush.msra.mxu1 %v347_v10 }
  0xe2   : > { %773 = vmatmul.msk.f32.vlgmr.msra.gmra.mxu1 %vm375_vm1, %v287_v18 }
  0xea   : > { %774 = vmatmul.msk.f32.gmra.mxu1 %vm375_vm1, %v288_v19 }
  0xf2   : > { %775 = vmatmul.msk.f32.gmra.mxu1 %vm375_vm1, %v289_v20 }
  0xfa   : > { %776 = vmatmul.msk.f32.gmra.mxu1 %vm375_vm1, %v290_v21 }
 0x102   : > { %777 = vmatmul.msk.f32.gmra.mxu1 %vm375_vm1, %v291_v22 }
 0x10a   : > { %778 = vmatmul.msk.f32.gmra.mxu1 %vm375_vm1, %v292_v23 }
 0x112   : > { %779 = vmatmul.msk.f32.gmra.mxu1 %vm375_vm1, %v293_v24 }
 0x11a   : > { %780 = vmatmul.msk.f32.gmra.mxu1 %vm375_vm1, %v294_v25 }
 0x15f   : > { %v417_v26 = vpop.f32.mrf.mxu1 }
 0x160   : > { %v418_v47 = vadd.f32 %v859_v33, %v417_v26 }
 0x162   : > { %v441_v50 = vmax.f32 %v418_v47, 0.0 }
 0x167   : > { %v420_v27 = vpop.f32.mrf.mxu1 }
 0x168   : > { %v421_v45 = vadd.f32 %v859_v33, %v420_v27 }
 0x16a   : > { %v442_v49 = vmax.f32 %v421_v45, 0.0 }
 0x16f   : > { %v423_v28 = vpop.f32.mrf.mxu1 }
 0x170   : > { %v424_v43 = vadd.f32 %v859_v33, %v423_v28 }
 0x172   : > { %v443_v48 = vmax.f32 %v424_v43, 0.0 }
 0x177   : > { %v426_v29 = vpop.f32.mrf.mxu1 }
 0x178   : > { %v427_v41 = vadd.f32 %v859_v33, %v426_v29 }
 0x17a   : > { %v444_v46 = vmax.f32 %v427_v41, 0.0 }
 0x17f   : > { %v429_v30 = vpop.f32.mrf.mxu1 }
 0x180   : > { %v430_v39 = vadd.f32 %v859_v33, %v429_v30 }
 0x182   : > { %v445_v44 = vmax.f32 %v430_v39, 0.0 }
 0x187   : > { %v432_v31 = vpop.f32.mrf.mxu1 }
 0x188   : > { %v433_v37 = vadd.f32 %v859_v33, %v432_v31 }
 0x18a   : > { %v446_v42 = vmax.f32 %v433_v37, 0.0 }
 0x18f   : > { %v435_v32 = vpop.f32.mrf.mxu1 }
 0x190   : > { %v436_v35 = vadd.f32 %v859_v33, %v435_v32 }
 0x192   : > { %v447_v40 = vmax.f32 %v436_v35, 0.0 }
 0x197   : > { %v438_v34 = vpop.f32.mrf.mxu1 }
 0x198   : > { %v439_v36 = vadd.f32 %v859_v33, %v438_v34 }
 0x19a   : > { %v448_v38 = vmax.f32 %v439_v36, 0.0 }
 0x19c   : > { %457 = vmatpush.msra.mxu2 %v448_v38 }
 0x19e   : > { %458 = vmatpush.msra.mxu2 %v447_v40 }
 0x1a0   : > { %459 = vmatpush.msra.mxu2 %v446_v42 }
 0x1a2   : > { %460 = vmatpush.msra.mxu2 %v445_v44 }
 0x1a4   : > { %461 = vmatpush.msra.mxu2 %v444_v46 }
 0x1a6   : > { %462 = vmatpush.msra.mxu2 %v443_v48 }
 0x1a8   : > { %463 = vmatpush.msra.mxu2 %v442_v49 }
 0x1aa   : > { %464 = vmatpush.msra.mxu2 %v441_v50 }
 0x1ab   : > { %781 = vmatmul.msk.f32.vlgmr.msra.gmra.mxu2 %vm375_vm1, %v287_v18 }
 0x1b3   : > { %782 = vmatmul.msk.f32.gmra.mxu2 %vm375_vm1, %v288_v19 }
 0x1bb   : > { %783 = vmatmul.msk.f32.gmra.mxu2 %vm375_vm1, %v289_v20 }
 0x1c3   : > { %784 = vmatmul.msk.f32.gmra.mxu2 %vm375_vm1, %v290_v21 }
 0x1cb   : > { %785 = vmatmul.msk.f32.gmra.mxu2 %vm375_vm1, %v291_v22 }
 0x1d3   : > { %786 = vmatmul.msk.f32.gmra.mxu2 %vm375_vm1, %v292_v23 }
 0x1db   : > { %787 = vmatmul.msk.f32.gmra.mxu2 %vm375_vm1, %v293_v24 }
 0x1e3   : > { %788 = vmatmul.msk.f32.gmra.mxu2 %vm375_vm1, %v294_v25 }
 0x22e   : > { %v466_v55 = vpop.f32.mrf.mxu2 }
 0x22f   : > { %789 = vmatmul.msk.f32.vlgmr.msra.gmra.mxu3 %vm498_vm2, %v466_v55 }
 0x236   : > { %v469_v56 = vpop.f32.mrf.mxu2 }
 0x237   : > { %790 = vmatmul.msk.f32.gmra.mxu3 %vm498_vm2, %v469_v56 }
 0x23e   : > { %v472_v57 = vpop.f32.mrf.mxu2 }
 0x23f   : > { %791 = vmatmul.msk.f32.gmra.mxu3 %vm498_vm2, %v472_v57 }
 0x246   : > { %v475_v58 = vpop.f32.mrf.mxu2 }
 0x247   : > { %792 = vmatmul.msk.f32.gmra.mxu3 %vm498_vm2, %v475_v58 }
 0x24e   : > { %v478_v59 = vpop.f32.mrf.mxu2 }
 0x24f   : > { %793 = vmatmul.msk.f32.gmra.mxu3 %vm498_vm2, %v478_v59 }
 0x256   : > { %v481_v60 = vpop.f32.mrf.mxu2 }
 0x257   : > { %794 = vmatmul.msk.f32.gmra.mxu3 %vm498_vm2, %v481_v60 }
 0x25e   : > { %v484_v61 = vpop.f32.mrf.mxu2 }
 0x25f   : > { %795 = vmatmul.msk.f32.gmra.mxu3 %vm498_vm2, %v484_v61 }
 0x266   : > { %v487_v62 = vpop.f32.mrf.mxu2 }
 0x267   : > { %796 = vmatmul.msk.f32.gmra.mxu3 %vm498_vm2, %v487_v62 }
 0x2b2   : > { %v540_v0 = vpop.f32.mrf.mxu3 }
 0x2b3   : > { %v541_v1 = vadd.f32 %v860_v63, %v540_v0 }
 0x2b5   : > { %564 = vmax.xlane.f32.xlu0 %v541_v1 }
 0x2ba   : > { %v543_v2 = vpop.f32.mrf.mxu3 }
 0x2bb   : > { %v544_v3 = vadd.f32 %v860_v63, %v543_v2 }
 0x2bd   : > { %566 = vmax.xlane.f32.xlu0 %v544_v3 }
 0x2c2   : > { %v546_v4 = vpop.f32.mrf.mxu3 }
 0x2c3   : > { %v547_v5 = vadd.f32 %v860_v63, %v546_v4 }
 0x2c5   : > { %568 = vmax.xlane.f32.xlu1 %v547_v5 }
 0x2ca   : > { %v549_v6 = vpop.f32.mrf.mxu3 }
 0x2cb   : > { %v550_v7 = vadd.f32 %v860_v63, %v549_v6 }
 0x2cd   : > { %570 = vmax.xlane.f32.xlu1 %v550_v7 }
 0x2d2   : > { %v552_v8 = vpop.f32.mrf.mxu3 }
 0x2d3   : > { %v553_v9 = vadd.f32 %v860_v63, %v552_v8 }
 0x2d5   : > { %572 = vmax.xlane.f32.xlu2 %v553_v9 }
 0x2da   : > { %v555_v10 = vpop.f32.mrf.mxu3 }
 0x2db   : > { %v556_v11 = vadd.f32 %v860_v63, %v555_v10 }
 0x2dd   : > { %574 = vmax.xlane.f32.xlu2 %v556_v11 }
 0x2e2   : > { %v558_v12 = vpop.f32.mrf.mxu3 }
 0x2e3   : > { %v559_v13 = vadd.f32 %v860_v63, %v558_v12 }
 0x2e5   : > { %576 = vmax.xlane.f32.xlu0 %v559_v13 }
 0x2ea   : > { %v561_v14 = vpop.f32.mrf.mxu3 }
 0x2eb   : > { %v562_v15 = vadd.f32 %v860_v63, %v561_v14 }
 0x2ed   : > { %578 = vmax.xlane.f32.xlu1 %v562_v15 }
 0x328   : > { %v565_v16 = vpop.xlane.xlu0 %564 }
 0x329   : > { %v580_v17 = vsub.f32 %v541_v1, %v565_v16 }
 0x32b   : > { %v588_v18 = vmul.f32 1.442695, %v580_v17 }
 0x32d   : > { %861 = vpow2.f32 %v588_v18 }
 0x330   : > { %v567_v19 = vpop.xlane.xlu0 %566 }
 0x331   : > { %v581_v20 = vsub.f32 %v544_v3, %v567_v19 }
 0x333   : > { %v862_v21 = vpop.eup %861  ;;  %v590_v22 = vmul.f32 1.442695, %v581_v20 }
 0x334   : > { %604 = vadd.xlane.f32.xlu2 %v862_v21 }
 0x335   : > { %863 = vpow2.f32 %v590_v22 }
 0x338   : > { %v569_v23 = vpop.xlane.xlu1 %568 }
 0x339   : > { %v582_v24 = vsub.f32 %v547_v5, %v569_v23 }
 0x33b   : > { %v864_v25 = vpop.eup %863  ;;  %v592_v26 = vmul.f32 1.442695, %v582_v24 }
 0x33c   : > { %606 = vadd.xlane.f32.xlu0 %v864_v25 }
 0x33d   : > { %865 = vpow2.f32 %v592_v26 }
 0x340   : > { %v571_v27 = vpop.xlane.xlu1 %570 }
 0x341   : > { %v583_v28 = vsub.f32 %v550_v7, %v571_v27 }
 0x343   : > { %v866_v29 = vpop.eup %865  ;;  %v594_v30 = vmul.f32 1.442695, %v583_v28 }
 0x344   : > { %608 = vadd.xlane.f32.xlu1 %v866_v29 }
 0x345   : > { %867 = vpow2.f32 %v594_v30 }
 0x348   : > { %v573_v31 = vpop.xlane.xlu2 %572 }
 0x349   : > { %v584_v32 = vsub.f32 %v553_v9, %v573_v31 }
 0x34b   : > { %v868_v33 = vpop.eup %867  ;;  %v596_v34 = vmul.f32 1.442695, %v584_v32 }
 0x34c   : > { %610 = vadd.xlane.f32.xlu2 %v868_v33 }
 0x34d   : > { %869 = vpow2.f32 %v596_v34 }
 0x350   : > { %v575_v35 = vpop.xlane.xlu2 %574 }
 0x351   : > { %v585_v36 = vsub.f32 %v556_v11, %v575_v35 }
 0x353   : > { %v870_v37 = vpop.eup %869  ;;  %v598_v38 = vmul.f32 1.442695, %v585_v36 }
 0x354   : > { %612 = vadd.xlane.f32.xlu0 %v870_v37 }
 0x355   : > { %871 = vpow2.f32 %v598_v38 }
 0x358   : > { %v577_v39 = vpop.xlane.xlu0 %576 }
 0x359   : > { %v586_v40 = vsub.f32 %v559_v13, %v577_v39 }
 0x35b   : > { %v872_v41 = vpop.eup %871  ;;  %v600_v42 = vmul.f32 1.442695, %v586_v40 }
 0x35c   : > { %614 = vadd.xlane.f32.xlu1 %v872_v41 }
 0x35d   : > { %873 = vpow2.f32 %v600_v42 }
 0x360   : > { %v579_v43 = vpop.xlane.xlu1 %578 }
 0x361   : > { %v1154_v44 = vsub.f32 %v562_v15, %v579_v43 }
 0x363   : > { %v874_v45 = vpop.eup %873  ;;  %v602_v46 = vmul.f32 1.442695, %v1154_v44 }
 0x364   : > { %616 = vadd.xlane.f32.xlu2 %v874_v45 }
 0x365   : > { %875 = vpow2.f32 %v602_v46 }
 0x36b   : > { %v876_v47 = vpop.eup %875 }
 0x36c   : > { %618 = vadd.xlane.f32.xlu0 %v876_v47 }
 0x3a7   : > { %v605_v48 = vpop.xlane.xlu2 %604 }
 0x3a8   : > { %877 = vlog2.f32 %v605_v48 }
 0x3ae   : > { %v878_v49 = vpop.eup %877 }
 0x3af   : > { %v621_v50 = vmul.f32 0.6931472, %v878_v49  ;;  %v607_v51 = vpop.xlane.xlu0 %606 }
 0x3b0   : > { %879 = vlog2.f32 %v607_v51 }
 0x3b1   : > { %v636_v52 = vsub.f32 %v580_v17, %v621_v50 }
 0x3b3   : > { %644 = vst [vmem:[%s1160_s29] sm:$0xff] %v636_v52 }
 0x3b6   : > { %v880_v53 = vpop.eup %879 }
 0x3b7   : > { %v623_v54 = vmul.f32 0.6931472, %v880_v53  ;;  %v609_v55 = vpop.xlane.xlu1 %608 }
 0x3b8   : > { %881 = vlog2.f32 %v609_v55 }
 0x3b9   : > { %v637_v56 = vsub.f32 %v581_v20, %v623_v54 }
 0x3bb   : > { %645 = vst [vmem:[%s1160_s29 + $0x8] sm:$0xff] %v637_v56 }
 0x3be   : > { %v882_v57 = vpop.eup %881 }
 0x3bf   : > { %v625_v58 = vmul.f32 0.6931472, %v882_v57  ;;  %v611_v59 = vpop.xlane.xlu2 %610 }
 0x3c0   : > { %883 = vlog2.f32 %v611_v59 }
 0x3c1   : > { %v638_v60 = vsub.f32 %v582_v24, %v625_v58 }
 0x3c3   : > { %646 = vst [vmem:[%s1160_s29 + $0x10] sm:$0xff] %v638_v60 }
 0x3c6   : > { %v884_v61 = vpop.eup %883 }
 0x3c7   : > { %v627_v62 = vmul.f32 0.6931472, %v884_v61  ;;  %v613_v63 = vpop.xlane.xlu0 %612 }
 0x3c8   : > { %885 = vlog2.f32 %v613_v63 }
 0x3c9   : > { %v639_v0 = vsub.f32 %v583_v28, %v627_v62 }
 0x3cb   : > { %647 = vst [vmem:[%s1160_s29 + $0x18] sm:$0xff] %v639_v0 }
 0x3ce   : > { %v886_v1 = vpop.eup %885 }
 0x3cf   : > { %v629_v2 = vmul.f32 0.6931472, %v886_v1  ;;  %v615_v3 = vpop.xlane.xlu1 %614 }
 0x3d0   : > { %887 = vlog2.f32 %v615_v3 }
 0x3d1   : > { %v640_v4 = vsub.f32 %v584_v32, %v629_v2 }
 0x3d3   : > { %648 = vst [vmem:[%s1160_s29 + $0x20] sm:$0xff] %v640_v4 }
 0x3d6   : > { %v888_v5 = vpop.eup %887 }
 0x3d7   : > { %v631_v6 = vmul.f32 0.6931472, %v888_v5  ;;  %v617_v7 = vpop.xlane.xlu2 %616 }
 0x3d8   : > { %889 = vlog2.f32 %v617_v7 }
 0x3d9   : > { %v641_v8 = vsub.f32 %v585_v36, %v631_v6 }
 0x3db   : > { %649 = vst [vmem:[%s1160_s29 + $0x28] sm:$0xff] %v641_v8 }
 0x3de   : > { %v890_v9 = vpop.eup %889 }
 0x3df   : > { %v633_v10 = vmul.f32 0.6931472, %v890_v9  ;;  %v619_v11 = vpop.xlane.xlu0 %618 }
 0x3e0   : > { %891 = vlog2.f32 %v619_v11 }
 0x3e1   : > { %v642_v12 = vsub.f32 %v586_v40, %v633_v10 }
 0x3e3   : > { %650 = vst [vmem:[%s1160_s29 + $0x30] sm:$0xff] %v642_v12 }
 0x3e6   : > { %v892_v13 = vpop.eup %891 }
 0x3e7   : > { %v635_v14 = vmul.f32 0.6931472, %v892_v13 }
 0x3e9   : > { %v643_v15 = vsub.f32 %v1154_v44, %v635_v14 }
 0x3eb   : > { %651 = vst [vmem:[%s1160_s29 + $0x38] sm:$0xff] %v643_v15 }
 0x3ec   : > { %950 = shalt.err (!%p947_p8)
}
 0x3ed   : > { %s994_s26 = smov 128   ;;  %s995_s29 = smov 8  }
 0x3ee   : > { %809 = dma.vmem_to_hbm [thread:$0]  (%p1069_p5), %s666_s13, 1024, %s668_s14, %s653_s15, %s994_s26, %s994_s26, %s995_s29  }
 0x3ef PF: > { %p821_p9 = scmp.ge.s32.totalorder %s989_s24, 2  ;;  %s682_s9 = sand.u32 1, %s977_s21  }
 0x3f0   : > { %s683_s10 = scalar_lea.sflag [#allocation4], %s682_s9 }
 0x3f1   : > { %p816_p10 = pnand %p821_p9, %p1073_p6 }
 0x3f3   : > { %p817_p11 = pneg %p816_p10 }
 0x3f5   : > { %972 = dma.done.wait (%p817_p11), %s683_s10, 1024  }
 0x3f6   : > { %974 = vsyncadd (%p817_p11), %s683_s10, 4294966272  ;;  %p17_p12 = scmp.ge.s32.totalorder %s1056_s27, 4   ;;  %s1214_s21 = smov %s981_s22 }
 0x3f7   : > { %s1215_s22 = smov %s985_s23  ;;  %s1216_s23 = smov %s1067_s30 }
 0x3f8   : > { %s1217_s24 = smov %s1056_s27  ;;  %19 = sbr.rel (!%p17_p12) target bundleno = 4 (0x4), region = 87 }
 0x3fd   :  { %689 = vsyncpa [#allocation3], 1 }
 0x3fe   :  { %691 = vsyncpa [#allocation3 + $0x1], 1 }
 0x3ff   :  { %692 = vsyncpa [#allocation4], 1 }
 0x400   :  { %694 = vsyncpa [#allocation4 + $0x1], 1 }

</bundles_post_ra>
